<compile_context>
chip_gen: v5e
topology: v5e:2x2
jax: 0.10.0
libtpu: 0.0.40
codegen_flags: <defaults>
</compile_context>

<pallas_src>
import math
import functools

import jax
import jax.numpy as jnp
from jax.experimental import pallas as pl
from jax.experimental.pallas import tpu as pltpu


def make_positional_encoding(d_model: int, max_len: int = 5000,
                             dtype=jnp.float32) -> jnp.ndarray:
    """Deterministic pe buffer, identical math to the PyTorch __init__."""
    position = jnp.arange(max_len, dtype=jnp.float32)[:, None]            # (L, 1)
    div_term = jnp.exp(jnp.arange(0, d_model, 2, dtype=jnp.float32)
                       * (-math.log(10000.0) / d_model))                  # (ceil(D/2),)
    pe = jnp.zeros((max_len, 1, d_model), dtype=jnp.float32)
    pe = pe.at[:, 0, 0::2].set(jnp.sin(position * div_term))
    pe = pe.at[:, 0, 1::2].set(jnp.cos(position * div_term)[:, : d_model // 2])
    return pe.astype(dtype)


# ----------------------------------------------------------------------------
# Kernels
# ----------------------------------------------------------------------------

def _pe_kernel(x_ref, pe_ref, o_ref, *, B, lane_dense):
    x = x_ref[...]
    pe = pe_ref[...].astype(x.dtype)
    pe = jnp.tile(pe, (1, B)) if lane_dense else pe        # (tl, B*D) / (tl, 1, D)
    o_ref[...] = (x + pe).astype(o_ref.dtype)


def _pe_dropout_prng_kernel(seed_ref, x_ref, pe_ref, o_ref, *,
                            B, lane_dense, threshold, scale):
    # Re-seed per grid step so each tile gets an independent stream and the
    # grid axis stays order-independent ("parallel" -> both TCs on v7x).
    pltpu.prng_seed(seed_ref[0], pl.program_id(0))
    bits = pltpu.bitcast(pltpu.prng_random_bits(x_ref.shape), jnp.uint32)
    keep = bits < jnp.uint32(threshold)
    x = x_ref[...]
    pe = pe_ref[...].astype(x.dtype)
    pe = jnp.tile(pe, (1, B)) if lane_dense else pe
    gain = jnp.where(keep, jnp.asarray(scale, x.dtype), jnp.asarray(0.0, x.dtype))
    o_ref[...] = ((x + pe) * gain).astype(o_ref.dtype)


def _pe_dropout_mask_kernel(x_ref, pe_ref, m_ref, o_ref, *, B, lane_dense):
    # Debug / non-TPU fallback: pre-scaled keep mask streamed from HBM.
    x = x_ref[...]
    pe = pe_ref[...].astype(x.dtype)
    pe = jnp.tile(pe, (1, B)) if lane_dense else pe
    o_ref[...] = ((x + pe) * m_ref[...]).astype(o_ref.dtype)


# ----------------------------------------------------------------------------
# Tiling helpers
# ----------------------------------------------------------------------------

def _vmem_budget_bytes() -> int:
    """Footprint budget for double-buffered streams, generation aware."""
    try:
        kind = jax.devices()[0].device_kind.lower()
    except Exception:
        return 12 << 20
    if "v5e" in kind or "v5 lite" in kind or "v5lite" in kind:
        return 12 << 20       # v5e: 16 MiB default scoped VMEM, leave headroom
    return 24 << 20           # v6e / v7x: 32 MiB default scoped VMEM


def _choose_tl(L: int, bytes_per_row: int, *, sublane: int,
               budget_bytes: int, min_steps: int = 4) -> int:
    """Rows per grid step.

    bytes_per_row = total bytes streamed per L-row across ALL arrays
    (x + out [+ mask] + pe); x2 for double-buffering must fit the budget.
    """
    rows = max(1, budget_bytes // (2 * max(1, bytes_per_row)))
    if L >= min_steps * sublane:
        rows = min(rows, pl.cdiv(L, min_steps))     # keep >= min_steps grid steps
    if rows >= L:
        return L
    rows = max(sublane, (rows // sublane) * sublane)
    return min(rows, L)


# ----------------------------------------------------------------------------
# Forward
# ----------------------------------------------------------------------------

def positional_encoding_forward(x: jnp.ndarray, pe: jnp.ndarray, *,
                                p: float = 0.1, training: bool = True,
                                rng_key=None, use_on_chip_prng=None) -> jnp.ndarray:
    """x: (L, B, D); pe: (max_len, 1, D).  Returns dropout(x + pe[:L])."""
    L, B, D = x.shape
    dtype = x.dtype
    itemsize = jnp.dtype(dtype).itemsize
    sublane = {4: 8, 2: 16, 1: 32}.get(itemsize, 8)     # dtype-aware packing

    apply_dropout = bool(training) and p > 0.0
    if apply_dropout and rng_key is None:
        raise ValueError("training-mode dropout requires an explicit rng_key")
    if use_on_chip_prng is None:
        use_on_chip_prng = (jax.default_backend() == "tpu")

    lane_dense = (D % 128 == 0)
    if lane_dense:
        # Lane-dense (L, B*D): unmasked full-vreg stores; pe lane-tiled over B.
        N = B * D
        x_in = x.reshape(L, N)
        pe_in = pe[:L, 0, :].astype(dtype)                          # (L, D)
        wide_bytes = N * itemsize
        make_wide_spec = lambda tl: pl.BlockSpec((tl, N), lambda i, *_: (i, 0))
        make_pe_spec = lambda tl: pl.BlockSpec((tl, D), lambda i, *_: (i, 0))
        out_struct = jax.ShapeDtypeStruct((L, N), dtype)
    else:
        # 3D blocks: pe broadcast over the (full-extent) middle axis.
        x_in = x
        pe_in = pe[:L].astype(dtype)                                # (L, 1, D)
        wide_bytes = B * D * itemsize
        make_wide_spec = lambda tl: pl.BlockSpec((tl, B, D), lambda i, *_: (i, 0, 0))
        make_pe_spec = lambda tl: pl.BlockSpec((tl, 1, D), lambda i, *_: (i, 0, 0))
        out_struct = jax.ShapeDtypeStruct((L, B, D), dtype)

    pe_bytes = D * itemsize
    n_wide = 3 if (apply_dropout and not use_on_chip_prng) else 2   # x + out (+ mask)
    tl = _choose_tl(L, n_wide * wide_bytes + pe_bytes,
                    sublane=sublane, budget_bytes=_vmem_budget_bytes())
    grid = (pl.cdiv(L, tl),)
    cparams = pltpu.CompilerParams(dimension_semantics=("parallel",))
    wide_spec, pe_spec = make_wide_spec(tl), make_pe_spec(tl)

    if not apply_dropout:
        cost = pl.CostEstimate(flops=L * B * D, transcendentals=0,
                               bytes_accessed=(2 * L * B * D + L * D) * itemsize)
        out = pl.pallas_call(
            functools.partial(_pe_kernel, B=B, lane_dense=lane_dense),
            out_shape=out_struct,
            grid=grid,
            in_specs=[wide_spec, pe_spec],
            out_specs=wide_spec,
            compiler_params=cparams,
            cost_estimate=cost,
        )(x_in, pe_in)
        return out.reshape(L, B, D)

    scale = (1.0 / (1.0 - p)) if p < 1.0 else 0.0

    if use_on_chip_prng:
        keep_prob = max(0.0, min(1.0, 1.0 - p))
        threshold = min(int(round(keep_prob * 2.0 ** 32)), 2 ** 32 - 1)
        seed = jax.random.randint(rng_key, (1,), 0, jnp.iinfo(jnp.int32).max,
                                  dtype=jnp.int32)
        cost = pl.CostEstimate(flops=3 * L * B * D, transcendentals=0,
                               bytes_accessed=(2 * L * B * D + L * D) * itemsize)
        out = pl.pallas_call(
            functools.partial(_pe_dropout_prng_kernel, B=B, lane_dense=lane_dense,
                              threshold=threshold, scale=scale),
            out_shape=out_struct,
            grid_spec=pltpu.PrefetchScalarGridSpec(
                num_scalar_prefetch=1,
                grid=grid,
                in_specs=[wide_spec, pe_spec],
                out_specs=wide_spec),
            compiler_params=cparams,
            cost_estimate=cost,
        )(seed, x_in, pe_in)
        return out.reshape(L, B, D)

    # TODO(synk): non-TPU/debug fallback streams a full-width mask from HBM;
    # on TPU the on-chip PRNG path above is always taken.
    keep = jax.random.bernoulli(rng_key, 1.0 - p, shape=x_in.shape)
    mask = keep.astype(dtype) * jnp.asarray(scale, dtype=dtype)
    cost = pl.CostEstimate(flops=2 * L * B * D, transcendentals=0,
                           bytes_accessed=(3 * L * B * D + L * D) * itemsize)
    out = pl.pallas_call(
        functools.partial(_pe_dropout_mask_kernel, B=B, lane_dense=lane_dense),
        out_shape=out_struct,
        grid=grid,
        in_specs=[wide_spec, pe_spec, wide_spec],
        out_specs=wide_spec,
        compiler_params=cparams,
        cost_estimate=cost,
    )(x_in, pe_in, mask)
    return out.reshape(L, B, D)


# ----------------------------------------------------------------------------
# Self-test
# ----------------------------------------------------------------------------

if __name__ == "__main__":
    p = 0.1
    max_len = 64
    L, B = 2, 8
    base_key = jax.random.PRNGKey(0)

    # d_model=32 exercises the 3D broadcast path; d_model=128 the lane-dense path.
    for d_model in (32, 128):
        kx, kdrop = jax.random.split(jax.random.fold_in(base_key, d_model))
        x = jax.random.normal(kx, (L, B, d_model), dtype=jnp.float32)
        pe = make_positional_encoding(d_model, max_len)
        ref = x + pe[:L]                    # broadcast over middle axis, like PyTorch

        # Eval mode (dropout = identity): exact check against plain-JAX reference.
        out_eval = jax.block_until_ready(
            positional_encoding_forward(x, pe, p=p, training=False))
        assert out_eval.shape == x.shape and out_eval.dtype == x.dtype
        assert jnp.allclose(out_eval, ref, atol=1e-6, rtol=1e-6)

        # Train mode: every output element is either 0 (dropped) or ref/(1-p) (kept).
        out_train = jax.block_until_ready(
            positional_encoding_forward(x, pe, p=p, training=True, rng_key=kdrop))
        assert out_train.shape == x.shape
        scaled = ref * (1.0 / (1.0 - p))
        is_zero = jnp.isclose(out_train, 0.0, atol=1e-6)
        is_kept = jnp.isclose(out_train, scaled, atol=1e-5, rtol=1e-5)
        assert bool(jnp.all(jnp.logical_or(is_zero, is_kept)))
        # Dropout statistics should be roughly keep-prob 0.9 over L*B*D elements.
        nonzero_target = jnp.logical_not(jnp.isclose(scaled, 0.0, atol=1e-6))
        dropped_frac = float(jnp.mean(jnp.logical_and(is_zero, nonzero_target)
                                      .astype(jnp.float32)))
        kept_frac = float(jnp.mean(is_kept.astype(jnp.float32)))
        assert kept_frac > 0.5, f"kept_frac={kept_frac}"
        assert dropped_frac < 0.5, f"dropped_frac={dropped_frac}"

    print("KERNEL_OK")
</pallas_src>

<mosaic_0001>
module attributes {stable_mosaic.version = 11 : i64} {
  func.func @_pe_kernel(%arg0: i32, %arg1: memref<2x8x32xf32, #tpu.memory_space<vmem>>, %arg2: memref<2x1x32xf32, #tpu.memory_space<vmem>>, %arg3: memref<2x8x32xf32, #tpu.memory_space<vmem>>) attributes {dimension_semantics = [#tpu.dimension_semantics<parallel>], iteration_bounds = array<i64: 1>, scalar_prefetch = 0 : i64, scratch_operands = 0 : i64, tpu.core_type = #tpu.core_type<tc>, window_params = [{transform_indices = @transform_0, window_bounds = array<i64: 2, 8, 32>}, {transform_indices = @transform_1, window_bounds = array<i64: 2, 1, 32>}, {transform_indices = @transform_2, window_bounds = array<i64: 2, 8, 32>}]} {
    %c0 = arith.constant 0 : index
    %c0_0 = arith.constant 0 : index
    %c0_1 = arith.constant 0 : index
    %0 = vector.load %arg1[%c0, %c0_0, %c0_1] : memref<2x8x32xf32, #tpu.memory_space<vmem>>, vector<2x8x32xf32>
    %c0_2 = arith.constant 0 : index
    %c0_3 = arith.constant 0 : index
    %c0_4 = arith.constant 0 : index
    %1 = vector.load %arg2[%c0_2, %c0_3, %c0_4] : memref<2x1x32xf32, #tpu.memory_space<vmem>>, vector<2x1x32xf32>
    %2 = vector.broadcast %1 : vector<2x1x32xf32> to vector<2x8x32xf32>
    %3 = arith.addf %0, %2 : vector<2x8x32xf32>
    %c0_5 = arith.constant 0 : index
    %c0_6 = arith.constant 0 : index
    %c0_7 = arith.constant 0 : index
    %4 = vector.load %arg3[%c0_5, %c0_6, %c0_7] : memref<2x8x32xf32, #tpu.memory_space<vmem>>, vector<2x8x32xf32>
    tpu.vector_store %arg3[%c0_5, %c0_6, %c0_7], %3 {strides = array<i32>} : memref<2x8x32xf32, #tpu.memory_space<vmem>>, vector<2x8x32xf32>,
    return
  }
  func.func @transform_0(%arg0: i32) -> (i32, i32, i32) {
    %c0_i32 = arith.constant 0 : i32
    %c0_i32_0 = arith.constant 0 : i32
    %c0_i32_1 = arith.constant 0 : i32
    return %arg0, %c0_i32, %c0_i32_0 : i32, i32, i32
  }
  func.func @transform_1(%arg0: i32) -> (i32, i32, i32) {
    %c0_i32 = arith.constant 0 : i32
    %c0_i32_0 = arith.constant 0 : i32
    %c0_i32_1 = arith.constant 0 : i32
    return %arg0, %c0_i32, %c0_i32_0 : i32, i32, i32
  }
  func.func @transform_2(%arg0: i32) -> (i32, i32, i32) {
    %c0_i32 = arith.constant 0 : i32
    %c0_i32_0 = arith.constant 0 : i32
    %c0_i32_1 = arith.constant 0 : i32
    return %arg0, %c0_i32, %c0_i32_0 : i32, i32, i32
  }
}

</mosaic_0001>

<bundles_post_ra>
// kernel: tpu_custom_call.1
= control target key start
LH: loop header
LB: loop body
LE: loop exit
PB: predicated region body
PF: predicated region fallthrough
CT: control target
= control target key end

     0   :  { %7 = vsyncpa [#allocation3], 0  ;;  %s203_s0 = inlined_call_operand.hbm [shape: f32[2,8,32], index: 0, kind: input, shape index: {}]   ;;  %s204_s1 = inlined_call_operand.hbm [shape: f32[2,1,32], index: 1, kind: input, shape index: {}]   ;;  %s205_s2 = inlined_call_operand.hbm [shape: f32[2,8,32], index: 2, kind: output, shape index: {}]  }
   0x1   :  { %8 = vsyncpa [#allocation6], 0 }
   0x2   :  { %9 = vsyncpa [#allocation4], 0  ;;  %s14_s11 = sshll.u32 %s203_s0, 4  ;;  %s166_s12 = smov [#allocation2]   ;;  %s15_s11 = int_to_ptr.hbm [resolvable:$true] %s14_s11 }
   0x3   :  { %s16_s13 = sshll.u32 %s166_s12, 4  ;;  %s27_s16 = sshll.u32 %s204_s1, 4  ;;  %s17_s13 = int_to_ptr.vmem [resolvable:$true] %s16_s13  ;;  %s28_s16 = int_to_ptr.hbm [resolvable:$true] %s27_s16 }
   0x4   :  { %s167_s17 = smov 128   ;;  %s168_s18 = smov 8  }
   0x5   :  { %22 = dma.hbm_to_vmem [thread:$0]  %s15_s11, 256, %s17_s13, [#allocation3], %s167_s17, %s167_s17, %s168_s18  }
   0x6   :  { %s169_s19 = smov [#allocation5]   ;;  %s170_s21 = smov 16  }
   0x7   :  { %s29_s20 = sshll.u32 %s169_s19, 4  ;;  %s171_s0 = smov 1   ;;  %s30_s20 = int_to_ptr.vmem [resolvable:$true] %s29_s20 }
   0x8   :  { %35 = dma.hbm_to_vmem [thread:$0]  %s28_s16, 32, %s30_s20, [#allocation6], %s170_s21, %s170_s21, %s171_s0  }
   0x9   :  { %160 = dma.done.wait [#allocation3], 256  }
   0xa   :  { %161 = vsyncadd [#allocation3], 4294967040 }
   0xb   :  { %162 = dma.done.wait [#allocation6], 32  }
   0xc   :  { %163 = vsyncadd [#allocation6], 4294967264  ;;  %s65_s1 = sshll.u32 %s205_s2, 4  ;;  %v44_v0 = vld [vmem:[#allocation2] sm:$0xff]  ;;  %v86_v1 = vld [vmem:[#allocation5] ss:$0 sm:$0xff]  ;;  %s66_s1 = int_to_ptr.hbm [resolvable:$true] %s65_s1 }
   0xd   :  { %s172_s24 = smov [#allocation7]   ;;  %vm56_vm0 = vcmask 261120   ;;  %v45_v2 = vld [vmem:[#allocation2 + $0x8] sm:$0xff]  ;;  %v87_v3 = vld [vmem:[#allocation5 + $0x1] ss:$0 sm:$0xff]  ;;  %v54_v4 = vadd.f32 %v86_v1, %v44_v0 }
   0xe   :  { %s63_s25 = sshll.u32 %s172_s24, 4  ;;  %v55_v5 = vadd.f32 %v87_v3, %v45_v2  ;;  %s64_s25 = int_to_ptr.vmem [resolvable:$true] %s63_s25 }
   0xf   :  { %57 = vst.msk [vmem:[#allocation7] sm:$0xff] %vm56_vm0, %v54_v4 }
  0x10   :  { %58 = vst.msk [vmem:[#allocation7 + $0x8] sm:$0xff] %vm56_vm0, %v55_v5 }
  0x11   :  { %71 = dma.vmem_to_hbm [thread:$0]  %s64_s25, 256, %s66_s1, [#allocation4], %s167_s17, %s167_s17, %s168_s18  }
  0x12   :  { %164 = dma.done.wait [#allocation4], 256  }
  0x13   :  { %165 = vsyncadd [#allocation4], 4294967040 }
  0x14   :  { %76 = vsyncpa [#allocation3], 1 }
  0x15   :  { %77 = vsyncpa [#allocation6], 1 }
  0x16   :  { %78 = vsyncpa [#allocation4], 1 }

</bundles_post_ra>
